<compile_context>
chip_gen: v7x
topology: tpu7x:2x2x1
jax: 0.10.0
libtpu: 0.0.40
codegen_flags: <defaults>
</compile_context>

<pallas_src>
import functools

import jax
import jax.numpy as jnp
import numpy as np
from jax.experimental import pallas as pl
from jax.experimental.pallas import tpu as pltpu


def _round_up(x, m):
    return ((x + m - 1) // m) * m


# --------------------------------------------------------------------------- kernel ---
def mlp_kernel(x_ref, w1_ref, b1_ref, w2_ref, b2_ref, w3_ref, b3_ref, o_ref):
    """Fused 3-layer MLP (matmul + bias + ReLU x2, final matmul + bias) on one batch tile.

    Weights/biases are VMEM-resident (constant index_map, single-buffered). Bias add,
    ReLU and accumulation stay fp32; operands are narrowed only for the MXU.
    """
    cdt = w1_ref.dtype                               # MXU operand dtype (f32 or bf16)
    x = x_ref[...].astype(cdt)                       # in-kernel cast: no extra HBM pass over x
    h1 = jnp.dot(x, w1_ref[...], preferred_element_type=jnp.float32) + b1_ref[...]
    h1 = jnp.maximum(h1, 0.0).astype(cdt)
    h2 = jnp.dot(h1, w2_ref[...], preferred_element_type=jnp.float32) + b2_ref[...]
    h2 = jnp.maximum(h2, 0.0).astype(cdt)
    out = jnp.dot(h2, w3_ref[...], preferred_element_type=jnp.float32) + b3_ref[...]
    o_ref[...] = out.astype(o_ref.dtype)             # full-width (tile_b, O) store, no pad/slice


# ----------------------------------------------------------------- one-time param prep ---
def prepare_params(params, *, use_bf16=True):
    """One-time parameter prep (call once, reuse across forwards).

    Pads hidden dims to multiples of 128 (exact: zero weight columns/rows + zero bias,
    ReLU(0)=0) and casts weights to the MXU operand dtype. Biases stay fp32. The output
    dim O is deliberately left unpadded to keep the output writeback lane-exact.
    """
    w1, b1, w2, b2, w3, b3 = (params[k] for k in ("w1", "b1", "w2", "b2", "w3", "b3"))
    H1, H2 = w1.shape[1], w2.shape[1]
    H1p, H2p = _round_up(H1, 128), _round_up(H2, 128)
    wdt = jnp.bfloat16 if use_bf16 else w1.dtype
    # TODO(synk): add an fp8 (per-channel scaled) weight path as the v7x fast mode.
    w1p = jnp.pad(w1, ((0, 0), (0, H1p - H1))).astype(wdt)
    b1p = jnp.pad(b1, ((0, 0), (0, H1p - H1))).astype(jnp.float32)
    w2p = jnp.pad(w2, ((0, H1p - H1), (0, H2p - H2))).astype(wdt)
    b2p = jnp.pad(b2, ((0, 0), (0, H2p - H2))).astype(jnp.float32)
    w3p = jnp.pad(w3, ((0, H2p - H2), (0, 0))).astype(wdt)
    b3p = b3.astype(jnp.float32)
    return {"w1": w1p, "b1": b1p, "w2": w2p, "b2": b2p, "w3": w3p, "b3": b3p}


# ------------------------------------------------------------------------ sizing helpers ---
def _choose_tile_b(B, D, H1p, H2p, O):
    """128-aligned batch tile; >=2 grid steps for larger B (v7x megacore gets work on
    both TCs); capped so fp32 intermediates + double-buffered x/out stay within VMEM."""
    if B <= 128:
        return _round_up(B, 8)
    t = _round_up(-(-B // 2), 128)                              # ~B/2, 128-aligned
    per_row = 2 * D * 4 + 2 * O * 4 + (H1p + H2p + max(H1p, H2p, O)) * 4
    cap = max(128, ((24 << 20) // max(per_row, 1)) // 128 * 128)
    return int(min(t, cap, 2048))


def _vmem_limit_bytes(tile_b, D, H1p, H2p, O, wt_bytes):
    """Footprint-based VMEM request (double-buffered activations, single-buffered weights,
    fp32 intermediates) with 2x margin; clamped to [16 MiB, 64 MiB] so it fits v7x."""
    x_buf = 2 * tile_b * D * 4
    o_buf = 2 * tile_b * O * 4
    weights = (D * H1p + H1p * H2p + H2p * O) * wt_bytes
    biases = (H1p + H2p + O) * 4 * 2
    interm = tile_b * (H1p + H2p + max(H1p, H2p, O)) * 4
    est = x_buf + o_buf + weights + biases + interm
    return int(min(max(2 * est + (8 << 20), 16 << 20), 64 << 20))


# ------------------------------------------------------------------------------ forward ---
@functools.partial(jax.jit, static_argnames=("tile_b",))
def text_model_forward(features, prepped, *, tile_b=None):
    """features: [B, D] float32.  prepped: output of prepare_params (padded/cast weights,
    stored as [in_dim, out_dim])."""
    w1, b1, w2, b2, w3, b3 = (prepped[k] for k in ("w1", "b1", "w2", "b2", "w3", "b3"))
    B, D = features.shape
    H1p, H2p, O = w1.shape[1], w2.shape[1], w3.shape[1]

    if tile_b is None:
        tile_b = _choose_tile_b(B, D, H1p, H2p, O)
    tile_b = max(8, _round_up(min(int(tile_b), _round_up(B, 8)), 8))
    grid = (pl.cdiv(B, tile_b),)

    wt_bytes = jnp.dtype(w1.dtype).itemsize
    vmem_bytes = _vmem_limit_bytes(tile_b, D, H1p, H2p, O, wt_bytes)

    cost = pl.CostEstimate(
        flops=2 * B * (D * H1p + H1p * H2p + H2p * O),
        transcendentals=0,
        bytes_accessed=(B * D * 4 + B * O * 4
                        + (D * H1p + H1p * H2p + H2p * O) * wt_bytes
                        + (H1p + H2p + O) * 4),
    )

    resident = pl.Buffered(1)  # constant index_map -> single buffer is enough

    out = pl.pallas_call(
        mlp_kernel,
        out_shape=jax.ShapeDtypeStruct((B, O), jnp.float32),
        grid=grid,
        in_specs=[
            pl.BlockSpec((tile_b, D), lambda i: (i, 0)),   # activations: tiled, double-buffered
            pl.BlockSpec((D, H1p), lambda i: (0, 0), pipeline_mode=resident),
            pl.BlockSpec((1, H1p), lambda i: (0, 0), pipeline_mode=resident),
            pl.BlockSpec((H1p, H2p), lambda i: (0, 0), pipeline_mode=resident),
            pl.BlockSpec((1, H2p), lambda i: (0, 0), pipeline_mode=resident),
            pl.BlockSpec((H2p, O), lambda i: (0, 0), pipeline_mode=resident),
            pl.BlockSpec((1, O), lambda i: (0, 0), pipeline_mode=resident),
        ],
        out_specs=pl.BlockSpec((tile_b, O), lambda i: (i, 0)),
        compiler_params=pltpu.CompilerParams(
            dimension_semantics=("parallel",),             # batch steps split across v7x's 2 TCs
            vmem_limit_bytes=vmem_bytes,
        ),
        cost_estimate=cost,
    )(features, w1, b1, w2, b2, w3, b3)
    return out


# ------------------------------------------------------------------------------ helpers ---
def init_params(key, input_dim, hidden_dim1, hidden_dim2, output_dim):
    """Deterministic synthetic init (nn.Linear-like shapes, stored transposed)."""
    ks = jax.random.split(key, 6)

    def lin(kw, kb, fan_in, fan_out):
        bound = 1.0 / np.sqrt(fan_in)
        w = jax.random.uniform(kw, (fan_in, fan_out), jnp.float32, -bound, bound)
        b = jax.random.uniform(kb, (1, fan_out), jnp.float32, -bound, bound)
        return w, b

    w1, b1 = lin(ks[0], ks[1], input_dim, hidden_dim1)
    w2, b2 = lin(ks[2], ks[3], hidden_dim1, hidden_dim2)
    w3, b3 = lin(ks[4], ks[5], hidden_dim2, output_dim)
    return {"w1": w1, "b1": b1, "w2": w2, "b2": b2, "w3": w3, "b3": b3}


def reference_forward(features, params):
    h1 = jnp.maximum(features @ params["w1"] + params["b1"], 0.0)
    h2 = jnp.maximum(h1 @ params["w2"] + params["b2"], 0.0)
    return h2 @ params["w3"] + params["b3"]


if __name__ == "__main__":
    key = jax.random.PRNGKey(0)
    kx, kp = jax.random.split(key)

    # Small shapes consistent with the module spec; tile_b=32 exercises a multi-step,
    # megacore-parallel batch grid on the fp32 path.
    B, INPUT_DIM, H1, H2, OUT = 64, 32, 64, 32, 8
    features = jax.random.normal(kx, (B, INPUT_DIM), jnp.float32)
    params = init_params(kp, INPUT_DIM, H1, H2, OUT)
    ref = reference_forward(features, params)

    # fp32 MXU path: exact (hidden-dim zero padding is mathematically neutral).
    prepped_f32 = prepare_params(params, use_bf16=False)
    logits = jax.block_until_ready(text_model_forward(features, prepped_f32, tile_b=32))
    np.testing.assert_allclose(np.asarray(logits), np.asarray(ref), rtol=1e-5, atol=1e-5)

    # bf16 MXU operands (default perf mode), fp32 accumulation: looser tolerance.
    prepped_bf16 = prepare_params(params, use_bf16=True)
    logits_bf16 = jax.block_until_ready(text_model_forward(features, prepped_bf16))
    np.testing.assert_allclose(np.asarray(logits_bf16), np.asarray(ref), rtol=5e-2, atol=5e-2)

    print("KERNEL_OK")
</pallas_src>

<mosaic_0001>
module attributes {stable_mosaic.version = 11 : i64} {
  func.func @mlp_kernel(%arg0: i32, %arg1: memref<32x32xf32, #tpu.memory_space<vmem>>, %arg2: memref<32x128xf32, #tpu.memory_space<vmem>>, %arg3: memref<1x128xf32, #tpu.memory_space<vmem>>, %arg4: memref<128x128xf32, #tpu.memory_space<vmem>>, %arg5: memref<1x128xf32, #tpu.memory_space<vmem>>, %arg6: memref<128x8xf32, #tpu.memory_space<vmem>>, %arg7: memref<1x8xf32, #tpu.memory_space<vmem>>, %arg8: memref<32x8xf32, #tpu.memory_space<vmem>>) attributes {dimension_semantics = [#tpu.dimension_semantics<parallel>], iteration_bounds = array<i64: 2>, scalar_prefetch = 0 : i64, scratch_operands = 0 : i64, tpu.core_type = #tpu.core_type<tc>, window_params = [{transform_indices = @transform_0, window_bounds = array<i64: 32, 32>}, {pipeline_mode = #tpu.pipeline_mode<synchronous>, transform_indices = @transform_1, window_bounds = array<i64: 32, 128>}, {pipeline_mode = #tpu.pipeline_mode<synchronous>, transform_indices = @transform_2, window_bounds = array<i64: 1, 128>}, {pipeline_mode = #tpu.pipeline_mode<synchronous>, transform_indices = @transform_3, window_bounds = array<i64: 128, 128>}, {pipeline_mode = #tpu.pipeline_mode<synchronous>, transform_indices = @transform_4, window_bounds = array<i64: 1, 128>}, {pipeline_mode = #tpu.pipeline_mode<synchronous>, transform_indices = @transform_5, window_bounds = array<i64: 128, 8>}, {pipeline_mode = #tpu.pipeline_mode<synchronous>, transform_indices = @transform_6, window_bounds = array<i64: 1, 8>}, {transform_indices = @transform_7, window_bounds = array<i64: 32, 8>}]} {
    %c0 = arith.constant 0 : index
    %c0_0 = arith.constant 0 : index
    %0 = vector.load %arg1[%c0, %c0_0] : memref<32x32xf32, #tpu.memory_space<vmem>>, vector<32x32xf32>
    %c0_1 = arith.constant 0 : index
    %c0_2 = arith.constant 0 : index
    %1 = vector.load %arg2[%c0_1, %c0_2] : memref<32x128xf32, #tpu.memory_space<vmem>>, vector<32x128xf32>
    %cst = arith.constant dense<0.000000e+00> : vector<32x128xf32>
    %2 = tpu.matmul %0, %1, %cst {dimension_numbers = #tpu.dot_dimension_numbers<[1], [0], [0], [1], [0, 0, 1, 1], [], []>} : vector<32x32xf32>, vector<32x128xf32>, vector<32x128xf32> -> vector<32x128xf32>
    %c0_3 = arith.constant 0 : index
    %c0_4 = arith.constant 0 : index
    %3 = vector.load %arg3[%c0_3, %c0_4] : memref<1x128xf32, #tpu.memory_space<vmem>>, vector<1x128xf32>
    %4 = vector.broadcast %3 : vector<1x128xf32> to vector<32x128xf32>
    %5 = arith.addf %2, %4 : vector<32x128xf32>
    %cst_5 = arith.constant 0.000000e+00 : f32
    %6 = vector.broadcast %cst_5 : f32 to vector<32x128xf32>
    %7 = arith.maximumf %5, %6 : vector<32x128xf32>
    %c0_6 = arith.constant 0 : index
    %c0_7 = arith.constant 0 : index
    %8 = vector.load %arg4[%c0_6, %c0_7] : memref<128x128xf32, #tpu.memory_space<vmem>>, vector<128x128xf32>
    %cst_8 = arith.constant dense<0.000000e+00> : vector<32x128xf32>
    %9 = tpu.matmul %7, %8, %cst_8 {dimension_numbers = #tpu.dot_dimension_numbers<[1], [0], [0], [1], [0, 0, 1, 1], [], []>} : vector<32x128xf32>, vector<128x128xf32>, vector<32x128xf32> -> vector<32x128xf32>
    %c0_9 = arith.constant 0 : index
    %c0_10 = arith.constant 0 : index
    %10 = vector.load %arg5[%c0_9, %c0_10] : memref<1x128xf32, #tpu.memory_space<vmem>>, vector<1x128xf32>
    %11 = vector.broadcast %10 : vector<1x128xf32> to vector<32x128xf32>
    %12 = arith.addf %9, %11 : vector<32x128xf32>
    %cst_11 = arith.constant 0.000000e+00 : f32
    %13 = vector.broadcast %cst_11 : f32 to vector<32x128xf32>
    %14 = arith.maximumf %12, %13 : vector<32x128xf32>
    %c0_12 = arith.constant 0 : index
    %c0_13 = arith.constant 0 : index
    %15 = vector.load %arg6[%c0_12, %c0_13] : memref<128x8xf32, #tpu.memory_space<vmem>>, vector<128x8xf32>
    %cst_14 = arith.constant dense<0.000000e+00> : vector<32x8xf32>
    %16 = tpu.matmul %14, %15, %cst_14 {dimension_numbers = #tpu.dot_dimension_numbers<[1], [0], [0], [1], [0, 0, 1, 1], [], []>} : vector<32x128xf32>, vector<128x8xf32>, vector<32x8xf32> -> vector<32x8xf32>
    %c0_15 = arith.constant 0 : index
    %c0_16 = arith.constant 0 : index
    %17 = vector.load %arg7[%c0_15, %c0_16] : memref<1x8xf32, #tpu.memory_space<vmem>>, vector<1x8xf32>
    %18 = vector.broadcast %17 : vector<1x8xf32> to vector<32x8xf32>
    %19 = arith.addf %16, %18 : vector<32x8xf32>
    %c0_17 = arith.constant 0 : index
    %c0_18 = arith.constant 0 : index
    %20 = vector.load %arg8[%c0_17, %c0_18] : memref<32x8xf32, #tpu.memory_space<vmem>>, vector<32x8xf32>
    tpu.vector_store %arg8[%c0_17, %c0_18], %19 {strides = array<i32>} : memref<32x8xf32, #tpu.memory_space<vmem>>, vector<32x8xf32>,
    return
  }
  func.func @transform_0(%arg0: i32) -> (i32, i32) {
    %c0_i32 = arith.constant 0 : i32
    %c0_i32_0 = arith.constant 0 : i32
    return %arg0, %c0_i32 : i32, i32
  }
  func.func @transform_1(%arg0: i32) -> (i32, i32) {
    %c0_i32 = arith.constant 0 : i32
    %c0_i32_0 = arith.constant 0 : i32
    %c0_i32_1 = arith.constant 0 : i32
    return %c0_i32, %c0_i32_0 : i32, i32
  }
  func.func @transform_2(%arg0: i32) -> (i32, i32) {
    %c0_i32 = arith.constant 0 : i32
    %c0_i32_0 = arith.constant 0 : i32
    %c0_i32_1 = arith.constant 0 : i32
    return %c0_i32, %c0_i32_0 : i32, i32
  }
  func.func @transform_3(%arg0: i32) -> (i32, i32) {
    %c0_i32 = arith.constant 0 : i32
    %c0_i32_0 = arith.constant 0 : i32
    %c0_i32_1 = arith.constant 0 : i32
    return %c0_i32, %c0_i32_0 : i32, i32
  }
  func.func @transform_4(%arg0: i32) -> (i32, i32) {
    %c0_i32 = arith.constant 0 : i32
    %c0_i32_0 = arith.constant 0 : i32
    %c0_i32_1 = arith.constant 0 : i32
    return %c0_i32, %c0_i32_0 : i32, i32
  }
  func.func @transform_5(%arg0: i32) -> (i32, i32) {
    %c0_i32 = arith.constant 0 : i32
    %c0_i32_0 = arith.constant 0 : i32
    %c0_i32_1 = arith.constant 0 : i32
    return %c0_i32, %c0_i32_0 : i32, i32
  }
  func.func @transform_6(%arg0: i32) -> (i32, i32) {
    %c0_i32 = arith.constant 0 : i32
    %c0_i32_0 = arith.constant 0 : i32
    %c0_i32_1 = arith.constant 0 : i32
    return %c0_i32, %c0_i32_0 : i32, i32
  }
  func.func @transform_7(%arg0: i32) -> (i32, i32) {
    %c0_i32 = arith.constant 0 : i32
    %c0_i32_0 = arith.constant 0 : i32
    return %arg0, %c0_i32 : i32, i32
  }
}

</mosaic_0001>

<bundles_post_ra>
// kernel: text_model_forward.1
= control target key start
LH: loop header
LB: loop body
LE: loop exit
PB: predicated region body
PF: predicated region fallthrough
CT: control target
= control target key end

     0   :  { %s964_s24 = smov 0   ;;  %s1109_s0 = inlined_call_operand.vmem [shape: f32[64,32], index: 0, kind: input, shape index: {}]   ;;  %s1110_s1 = inlined_call_operand.vmem [shape: f32[32,128], index: 1, kind: input, shape index: {}]   ;;  %s1111_s2 = inlined_call_operand.vmem [shape: f32[1,128], index: 2, kind: input, shape index: {}]   ;;  %s1112_s3 = inlined_call_operand.vmem [shape: f32[128,128], index: 3, kind: input, shape index: {}]   ;;  %s1113_s4 = inlined_call_operand.vmem [shape: f32[1,128], index: 4, kind: input, shape index: {}]   ;;  %s1114_s5 = inlined_call_operand.vmem [shape: f32[128,8], index: 5, kind: input, shape index: {}]   ;;  %s1115_s6 = inlined_call_operand.vmem [shape: f32[1,8], index: 6, kind: input, shape index: {}]   ;;  %s1116_s7 = inlined_call_operand.vmem [shape: f32[64,8], index: 7, kind: output, shape index: {}]  }
   0x1 LB: > { %s680_s25 = sadd.s32 4294967295, %s922_s24   ;;  %p684_p0 = scmp.ge.s32.totalorder %s922_s24, 1  ;;  %s922_s24 = sphi %s964_s24, %s17_s24  }
   0x2   : > { %p238_p1 = scmp.lt.s32.totalorder %s922_s24, 3 }
   0x4   : > { %p239_p2 = pnand %p684_p0, %p238_p1 }
   0x5   : > { %v286_v0 = vld [vmem:[%s1110_s1] sm:$0xff] (!%p239_p2)  ;;  %v287_v1 = vld [vmem:[%s1110_s1 + $0x8] sm:$0xff] (!%p239_p2)  ;;  %v288_v2 = vld [vmem:[%s1110_s1 + $0x10] sm:$0xff] (!%p239_p2)  ;;  %s685_s9 = sshll.u32 (!%p239_p2), %s680_s25, 2  ;;  %vm297_vm0 = vcmask (!%p239_p2), 261120   ;;  %vm619_vm1 = vcmask (!%p239_p2), 64512  }
   0x6   : > { %242 = sbr.rel (%p239_p2) target bundleno = 674 (0x2a2), region = 48  ;;  %v836_v3 = vpack.c.bf16 (!%p239_p2), %v287_v1, %v286_v0  ;;  %v289_v4 = vld [vmem:[%s1110_s1 + $0x18] sm:$0xff] (!%p239_p2)  ;;  %p271_p3 = scmp.lt.s32.totalorder (!%p239_p2), %s685_s9, 7  ;;  %v399_v5 = vld [vmem:[%s1112_s3] sm:$0xff] (!%p239_p2)  ;;  %v400_v6 = vld [vmem:[%s1112_s3 + $0x8] sm:$0xff] (!%p239_p2) }
   0x7   : > { %v840_v7 = vpack.c.bf16 (!%p239_p2), %v289_v4, %v288_v2  ;;  %v844_v8 = vpack.c.bf16 (!%p239_p2), %v400_v6, %v399_v5  ;;  %v401_v9 = vld [vmem:[%s1112_s3 + $0x10] sm:$0xff] (!%p239_p2)  ;;  %v402_v10 = vld [vmem:[%s1112_s3 + $0x18] sm:$0xff] (!%p239_p2)  ;;  %v403_v12 = vld [vmem:[%s1112_s3 + $0x20] sm:$0xff] (!%p239_p2) }
   0x8   : > { %837 = vmatprep.subr.bf16.mxu0 (!%p239_p2), %v836_v3  ;;  %v848_v11 = vpack.c.bf16 (!%p239_p2), %v402_v10, %v401_v9  ;;  %v404_v13 = vld [vmem:[%s1112_s3 + $0x28] sm:$0xff] (!%p239_p2)  ;;  %v405_v16 = vld [vmem:[%s1112_s3 + $0x30] sm:$0xff] (!%p239_p2)  ;;  %v406_v17 = vld [vmem:[%s1112_s3 + $0x38] sm:$0xff] (!%p239_p2) }
   0x9   : > { %839 = vmatpush3.bf16.msra.mxu0 (!%p239_p2), %v836_v3  ;;  %845 = vmatprep.subr.bf16.mxu1 (!%p239_p2), %v844_v8  ;;  %v852_v14 = vpack.c.bf16 (!%p239_p2), %v404_v13, %v403_v12  ;;  %v856_v20 = vpack.c.bf16 (!%p239_p2), %v406_v17, %v405_v16  ;;  %v407_v21 = vld [vmem:[%s1112_s3 + $0x40] sm:$0xff] (!%p239_p2)  ;;  %v408_v22 = vld [vmem:[%s1112_s3 + $0x48] sm:$0xff] (!%p239_p2)  ;;  %v409_v25 = vld [vmem:[%s1112_s3 + $0x50] sm:$0xff] (!%p239_p2) }
   0xa   : > { %841 = vmatprep.subr.bf16.mxu0 (!%p239_p2), %v840_v7  ;;  %847 = vmatpush3.bf16.msra.mxu1 (!%p239_p2), %v844_v8  ;;  %v860_v24 = vpack.c.bf16 (!%p239_p2), %v408_v22, %v407_v21  ;;  %v410_v26 = vld [vmem:[%s1112_s3 + $0x58] sm:$0xff] (!%p239_p2)  ;;  %v411_v28 = vld [vmem:[%s1112_s3 + $0x60] sm:$0xff] (!%p239_p2)  ;;  %v412_v29 = vld [vmem:[%s1112_s3 + $0x68] sm:$0xff] (!%p239_p2) }
   0xb   : > { %849 = vmatprep.subr.bf16.mxu1 (!%p239_p2), %v848_v11  ;;  %v864_v27 = vpack.c.bf16 (!%p239_p2), %v410_v26, %v409_v25  ;;  %v868_v30 = vpack.c.bf16 (!%p239_p2), %v412_v29, %v411_v28  ;;  %v413_v31 = vld [vmem:[%s1112_s3 + $0x70] sm:$0xff] (!%p239_p2)  ;;  %v414_v32 = vld [vmem:[%s1112_s3 + $0x78] sm:$0xff] (!%p239_p2)  ;;  %v511_v34 = vld [vmem:[%s1114_s5] sm:$0xff] (!%p239_p2) }
   0xc   : > { %v872_v33 = vpack.c.bf16 (!%p239_p2), %v414_v32, %v413_v31  ;;  %v512_v35 = vld [vmem:[%s1114_s5 + $0x8] sm:$0xff] (!%p239_p2)  ;;  %v513_v36 = vld [vmem:[%s1114_s5 + $0x10] sm:$0xff] (!%p239_p2)  ;;  %v514_v38 = vld [vmem:[%s1114_s5 + $0x18] sm:$0xff] (!%p239_p2) }
   0xd   : > { %s1118_s9 = smov (!%p271_p3, %s685_s9), 7  ;;  %843 = vmatpush3.bf16.msra.mxu0 %v840_v7  ;;  %v876_v37 = vpack.c.bf16 %v512_v35, %v511_v34  ;;  %v880_v39 = vpack.c.bf16 %v514_v38, %v513_v36  ;;  %v515_v40 = vld [vmem:[%s1114_s5 + $0x20] sm:$0xff]  ;;  %v516_v41 = vld [vmem:[%s1114_s5 + $0x28] sm:$0xff]  ;;  %v517_v43 = vld [vmem:[%s1114_s5 + $0x30] sm:$0xff] }
   0xe   : > { %s686_s25 = sshll.u32 %s1118_s9, 3  ;;  %851 = vmatpush3.bf16.msra.mxu1 %v848_v11  ;;  %v884_v42 = vpack.c.bf16 %v516_v41, %v515_v40  ;;  %v518_v44 = vld [vmem:[%s1114_s5 + $0x38] sm:$0xff]  ;;  %v519_v46 = vld [vmem:[%s1114_s5 + $0x40] sm:$0xff]  ;;  %v520_v47 = vld [vmem:[%s1114_s5 + $0x48] sm:$0xff] }
   0xf   : > { %s274_s28 = scalar_lea.vmem %s1109_s0, %s686_s25  ;;  %853 = vmatprep.subr.bf16.mxu1 %v852_v14  ;;  %877 = vmatprep.subr.bf16.mxu0 %v876_v37  ;;  %v888_v45 = vpack.c.bf16 %v518_v44, %v517_v43  ;;  %v892_v48 = vpack.c.bf16 %v520_v47, %v519_v46  ;;  %v521_v49 = vld [vmem:[%s1114_s5 + $0x50] sm:$0xff]  ;;  %v522_v50 = vld [vmem:[%s1114_s5 + $0x58] sm:$0xff]  ;;  %v523_v52 = vld [vmem:[%s1114_s5 + $0x60] sm:$0xff]  ;;  %s280_s29 = scalar_lea.vmem %s1116_s7, %s686_s25 }
  0x10   : > { %v282_v15 = vld [vmem:[%s274_s28] sm:$0xff]  ;;  %v283_v18 = vld [vmem:[%s274_s28 + $0x8] sm:$0xff]  ;;  %v284_v19 = vld [vmem:[%s274_s28 + $0x10] sm:$0xff]  ;;  %v896_v51 = vpack.c.bf16 %v522_v50, %v521_v49 }
  0x11   : > { %754 = vmatprep.mubr.msk.f32.mxu0 %vm297_vm0, %v282_v15  ;;  %v285_v23 = vld [vmem:[%s274_s28 + $0x18] sm:$0xff]  ;;  %v524_v53 = vld [vmem:[%s1114_s5 + $0x68] sm:$0xff]  ;;  %v689_v55 = vld [vmem:[%s1111_s2] ss:$0 sm:$0xff] }
  0x12   : > { %755 = vmatmul.mubr.msk.f32.vlgmr.msra.gmra.mrb[0].mxu0 %vm297_vm0, %v283_v18  ;;  %855 = vmatpush3.bf16.msra.mxu1 %v852_v14  ;;  %v900_v54 = vpack.c.bf16 %v524_v53, %v523_v52  ;;  %v525_v4 = vld [vmem:[%s1114_s5 + $0x70] sm:$0xff]  ;;  %v526_v5 = vld [vmem:[%s1114_s5 + $0x78] sm:$0xff]  ;;  %v694_v7 = vld [vmem:[%s1113_s4] ss:$0 sm:$0xff] }
  0x13   : > { %757 = vmatprep.mubr.msk.f32.mxu0 %vm297_vm0, %v284_v19  ;;  %857 = vmatprep.subr.bf16.mxu1 %v856_v20  ;;  %v904_v6 = vpack.c.bf16 %v526_v5, %v525_v4 }
  0x14   : > { %879 = vmatpush3.bf16.msra.mxu0 %v876_v37 }
  0x15   : > { %881 = vmatprep.subr.bf16.mxu0 %v880_v39 }
  0x16   : > { %758 = vmatmul.mubr.msk.f32.gmra.mrb[2].mxu0 %vm297_vm0, %v285_v23  ;;  %859 = vmatpush3.bf16.msra.mxu1 %v856_v20  ;;  %v695_v20 = vld [vmem:[%s1115_s6] ss:$0 sm:$0xff] }
  0x17   : > { %861 = vmatprep.subr.bf16.mxu1 %v860_v24 }
  0x18   : > { %883 = vmatpush3.bf16.msra.mxu0 %v880_v39 }
  0x19   : > { %885 = vmatprep.subr.bf16.mxu0 %v884_v42 }
  0x1a   : > { %863 = vmatpush3.bf16.msra.mxu1 %v860_v24 }
  0x1b   : > { %865 = vmatprep.subr.bf16.mxu1 %v864_v27 }
  0x1c   : > { %887 = vmatpush3.bf16.msra.mxu0 %v884_v42 }
  0x1d   : > { %889 = vmatprep.subr.bf16.mxu0 %v888_v45 }
  0x1e   : > { %867 = vmatpush3.bf16.msra.mxu1 %v864_v27 }
  0x1f   : > { %869 = vmatprep.subr.bf16.mxu1 %v868_v30 }
  0x20   : > { %891 = vmatpush3.bf16.msra.mxu0 %v888_v45 }
  0x21   : > { %893 = vmatprep.subr.bf16.mxu0 %v892_v48 }
  0x22   : > { %871 = vmatpush3.bf16.msra.mxu1 %v868_v30 }
  0x23   : > { %873 = vmatprep.subr.bf16.mxu1 %v872_v33 }
  0x24   : > { %895 = vmatpush3.bf16.msra.mxu0 %v892_v48 }
  0x25   : > { %897 = vmatprep.subr.bf16.mxu0 %v896_v51 }
  0x26   : > { %875 = vmatpush3.bf16.msra.mxu1 %v872_v33 }
  0x28   : > { %899 = vmatpush3.bf16.msra.mxu0 %v896_v51 }
  0x29   : > { %901 = vmatprep.subr.bf16.mxu0 %v900_v54 }
  0x2c   : > { %903 = vmatpush3.bf16.msra.mxu0 %v900_v54 }
  0x2d   : > { %905 = vmatprep.subr.bf16.mxu0 %v904_v6 }
  0x30   : > { %907 = vmatpush3.bf16.msra.mxu0 %v904_v6 }
  0xe5   : > { %v756_v56 = vpop.f32.mrb[0].mxu0 }
  0xe6   : > { %v382_v57 = vadd.f32 %v756_v56, %v689_v55  ;;  %v376_v58 = vpop.f32.mrb[1].mxu0 }
  0xe7   : > { %v377_v59 = vadd.f32 %v689_v55, %v376_v58 }
  0xe8   : > { %v396_v62 = vmax.f32 %v382_v57, 0.0 }
  0xe9   : > { %v759_v60 = vpop.f32.mrb[2].mxu0  ;;  %v395_v61 = vmax.f32 %v377_v59, 0.0 }
  0xea   : > { %v392_v63 = vadd.f32 %v759_v60, %v689_v55  ;;  %v386_v0 = vpop.f32.mrb[3].mxu0 }
  0xeb   : > { %v387_v1 = vadd.f32 %v689_v55, %v386_v0  ;;  %792 = vmatprep.mubr.f32.mxu1 %v395_v61 }
  0xec   : > { %793 = vmatmul.mubr.f32.vlgmr.msra.gmra.mrb[0].mxu1 %v396_v62  ;;  %v398_v3 = vmax.f32 %v392_v63, 0.0 }
  0xed   : > { %v397_v2 = vmax.f32 %v387_v1, 0.0 }
  0xef   : > { %795 = vmatprep.mubr.f32.mxu1 %v397_v2 }
  0xf0   : > { %796 = vmatmul.mubr.f32.gmra.mrb[2].mxu1 %v398_v3 }
 0x1bf   : > { %v794_v8 = vpop.f32.mrb[0].mxu1 }
 0x1c0   : > { %v494_v9 = vadd.f32 %v794_v8, %v694_v7  ;;  %v488_v10 = vpop.f32.mrb[1].mxu1 }
 0x1c1   : > { %v489_v11 = vadd.f32 %v694_v7, %v488_v10 }
 0x1c2   : > { %v508_v14 = vmax.f32 %v494_v9, 0.0 }
 0x1c3   : > { %v507_v12 = vmax.f32 %v489_v11, 0.0  ;;  %v797_v13 = vpop.f32.mrb[2].mxu1 }
 0x1c4   : > { %v504_v15 = vadd.f32 %v797_v13, %v694_v7  ;;  %v498_v16 = vpop.f32.mrb[3].mxu1 }
 0x1c5   : > { %v499_v17 = vadd.f32 %v694_v7, %v498_v16  ;;  %830 = vmatprep.mubr.f32.mxu0 %v507_v12 }
 0x1c6   : > { %831 = vmatmul.mubr.f32.vlgmr.msra.gmra.mrb[4].mxu0 %v508_v14  ;;  %v510_v19 = vmax.f32 %v504_v15, 0.0 }
 0x1c7   : > { %v509_v18 = vmax.f32 %v499_v17, 0.0 }
 0x1c9   : > { %833 = vmatprep.mubr.f32.mxu0 %v509_v18 }
 0x1ca   : > { %834 = vmatmul.mubr.f32.gmra.mrb[6].mxu0 %v510_v19 }
 0x299   : > { %v832_v21 = vpop.f32.mrb[4].mxu0 }
 0x29a   : > { %v600_v22 = vpop.f32.mrb[5].mxu0  ;;  %v606_v24 = vadd.f32 %v832_v21, %v695_v20 }
 0x29b   : > { %v601_v23 = vadd.f32 %v695_v20, %v600_v22 }
 0x29c   : > { %621 = vst.msk [vmem:[%s280_s29 + $0x8] sm:$0xff] %vm619_vm1, %v606_v24 }
 0x29d   : > { %620 = vst.msk [vmem:[%s280_s29] sm:$0xff] %vm619_vm1, %v601_v23  ;;  %v835_v25 = vpop.f32.mrb[6].mxu0 }
 0x29e   : > { %v610_v26 = vpop.f32.mrb[7].mxu0  ;;  %v616_v28 = vadd.f32 %v835_v25, %v695_v20 }
 0x29f   : > { %v611_v27 = vadd.f32 %v695_v20, %v610_v26 }
 0x2a0   : > { %623 = vst.msk [vmem:[%s280_s29 + $0x18] sm:$0xff] %vm619_vm1, %v616_v28 }
 0x2a1   : > { %622 = vst.msk [vmem:[%s280_s29 + $0x10] sm:$0xff] %vm619_vm1, %v611_v27 }
 0x2a2 PF: > { %s17_s24 = sadd.s32 1, %s922_s24  }
 0x2a3   : > { %p14_p4 = scmp.ge.s32.totalorder %s17_s24, 4  }
 0x2a5   :  { %16 = sbr.rel (!%p14_p4) target bundleno = 1 (0x1), region = 78 }

</bundles_post_ra>
